<compile_context>
chip_gen: v6e
topology: v6e:2x2x1
jax: 0.10.0
libtpu: 0.0.40
codegen_flags: <defaults>
</compile_context>

<pallas_src>
import jax
import jax.numpy as jnp
from jax.experimental import pallas as pl
from jax.experimental.pallas import tpu as pltpu

H1, H2 = 512, 128          # fc1/fc3 width, bottleneck width


def _round_up(x, m):
    return (x + m - 1) // m * m


def _device_info():
    """Per-generation tile target / resident-VMEM budget / physical cap / #TC."""
    kind = jax.devices()[0].device_kind.lower()
    if "v5" in kind:   # v5e: 4x128^2 MXU, 1 vst slot, 128 MiB VMEM
        return dict(bm_target=128, vmem_budget=96 << 20, vmem_cap=112 << 20, num_tc=1)
    if "7" in kind:    # v7x: 64 MiB VMEM per TensorCore, 2 TC/chip
        return dict(bm_target=256, vmem_budget=52 << 20, vmem_cap=60 << 20, num_tc=2)
    return dict(bm_target=256, vmem_budget=96 << 20, vmem_cap=112 << 20, num_tc=1)


# --------------------------------------------------------------------------
# Kernels
# --------------------------------------------------------------------------
def _fused_kernel(x_ref,
                  w1_ref, b1_ref, w2_ref, b2_ref,
                  w3_ref, b3_ref, w4_ref, b4_ref,
                  recon_ref, z_ref):
    """All four matmuls + bias + ReLU for one batch tile (weights VMEM-resident)."""
    cdt = w1_ref.dtype

    def dense_relu(a, w_ref, b_ref):
        acc = jnp.dot(a.astype(cdt), w_ref[...], preferred_element_type=jnp.float32)
        return jnp.maximum(acc + b_ref[...], 0.0)

    h1 = dense_relu(x_ref[...], w1_ref, b1_ref)          # (bm, 512)
    z = dense_relu(h1, w2_ref, b2_ref)                    # (bm, 128)
    z_ref[...] = z.astype(z_ref.dtype)
    h3 = dense_relu(z, w3_ref, b3_ref)                    # (bm, 512)
    recon_ref[...] = dense_relu(h3, w4_ref, b4_ref).astype(recon_ref.dtype)


def _encode_kernel(x_ref, w1_ref, b1_ref, w2_ref, b2_ref, z_ref, acc_ref):
    """Encode with fc1's K axis tiled over `dim` (grid = (batch, K-tiles))."""
    k = pl.program_id(1)
    cdt = w1_ref.dtype

    @pl.when(k == 0)
    def _():
        acc_ref[...] = jnp.zeros_like(acc_ref)

    acc_ref[...] += jnp.dot(x_ref[...].astype(cdt), w1_ref[...],
                            preferred_element_type=jnp.float32)

    @pl.when(k == pl.num_programs(1) - 1)
    def _():
        h1 = jnp.maximum(acc_ref[...] + b1_ref[...], 0.0)
        z = jnp.maximum(
            jnp.dot(h1.astype(cdt), w2_ref[...],
                    preferred_element_type=jnp.float32) + b2_ref[...], 0.0)
        z_ref[...] = z.astype(z_ref.dtype)


def _decode_kernel(z_ref, w3_ref, b3_ref, w4_ref, b4_ref, recon_ref, h3_ref):
    """Decode with fc4's N axis tiled over `dim` (grid = (batch, N-tiles))."""
    j = pl.program_id(1)
    cdt = w4_ref.dtype

    @pl.when(j == 0)
    def _():
        h3 = jnp.maximum(
            jnp.dot(z_ref[...].astype(cdt), w3_ref[...],
                    preferred_element_type=jnp.float32) + b3_ref[...], 0.0)
        h3_ref[...] = h3.astype(h3_ref.dtype)             # cached for all N tiles

    recon = jnp.maximum(
        jnp.dot(h3_ref[...], w4_ref[...],
                preferred_element_type=jnp.float32) + b4_ref[...], 0.0)
    recon_ref[...] = recon.astype(recon_ref.dtype)


# --------------------------------------------------------------------------
# VMEM estimates (bytes, rough)
# --------------------------------------------------------------------------
def _vmem_est_fused(bm, dim_p, w_isz, x_isz, out_isz):
    weights = w_isz * (dim_p * H1 + H1 * H2 + H2 * H1 + H1 * dim_p)
    biases = 4 * (H1 + H2 + H1 + dim_p)
    io = 2 * bm * (x_isz * dim_p + out_isz * dim_p + out_isz * H2)     # double-buffered
    tmp = 4 * bm * (2 * H1 + H2 + dim_p) + w_isz * bm * (dim_p + H1 + H2 + H1)
    return weights + biases + io + tmp


def _vmem_est_encode(bm, dt, w_isz, x_isz, out_isz):
    resident = w_isz * H1 * H2 + 4 * (H1 + H2)
    w1_bufs = 2 * w_isz * dt * H1
    io = 2 * bm * (x_isz * dt + out_isz * H2)
    acc = 4 * bm * H1
    tmp = 4 * bm * (H1 + H2) + w_isz * bm * (dt + H1)
    return resident + w1_bufs + io + acc + tmp


def _vmem_est_decode(bm, dt, w_isz, z_isz, out_isz):
    resident = w_isz * H2 * H1 + 4 * H1
    w4_bufs = 2 * (w_isz * H1 * dt + 4 * dt)
    io = 2 * bm * (z_isz * H2 + out_isz * dt)
    h3 = w_isz * bm * H1
    tmp = 4 * bm * (H1 + dt) + w_isz * bm * H2
    return resident + w4_bufs + io + h3 + tmp


def _vmem_limit_bytes(est, cap):
    return int(min(max(_round_up(est * 5 // 4, 1 << 20), 32 << 20), cap))


# --------------------------------------------------------------------------
# Parameter preparation (hoisted out of the forward — do this once)
# --------------------------------------------------------------------------
def prepare_ae_params(params, *, compute_dtype=jnp.bfloat16, force_tiled=False):
    """Pad `dim` to a lane-dense multiple and cast weights to the MXU dtype ONCE.

    Returns a dict consumed by `ae_forward`.  Also decides (per device) whether
    the forward should use the fused single-kernel path or the encode/decode
    split that tiles `dim` (large-gene-count case on v7x's 64 MiB VMEM).
    """
    w1, b1, w2, b2, w3, b3, w4, b4 = params
    dim = w1.shape[0]
    info = _device_info()
    w_isz = jnp.dtype(compute_dtype).itemsize

    dim_p128 = _round_up(dim, 128)
    fused_need = _vmem_est_fused(128, dim_p128, w_isz, 4, 4)
    tiled = bool(force_tiled or fused_need > info["vmem_budget"])

    dim_tile = 512 if tiled else 128
    dim_p = _round_up(dim, dim_tile)
    pad = dim_p - dim
    if pad:
        w1 = jnp.pad(w1, ((0, pad), (0, 0)))
        w4 = jnp.pad(w4, ((0, 0), (0, pad)))
        b4 = jnp.pad(b4.reshape(1, -1), ((0, 0), (0, pad)))

    w1, w2, w3, w4 = (w.astype(compute_dtype) for w in (w1, w2, w3, w4))
    b1, b2, b3, b4 = (b.astype(jnp.float32).reshape(1, -1) for b in (b1, b2, b3, b4))

    return dict(dim=dim, dim_p=dim_p, dim_tile=dim_tile, tiled=tiled,
                compute_dtype=compute_dtype,
                weights=(w1, b1, w2, b2, w3, b3, w4, b4))


# --------------------------------------------------------------------------
# Forward
# --------------------------------------------------------------------------
def ae_forward(x, prepared, *, bm=None, out_dtype=None):
    """AE forward.  x: (B, dim).  Returns (recon (B, dim), z (B, 128)).

    `prepared` must come from `prepare_ae_params` (padding/cast already done).
    Pass `out_dtype=jnp.bfloat16` (and bf16 `x`) to halve HBM streams when the
    caller tolerates bf16 I/O.
    """
    B, dim = x.shape
    assert dim == prepared["dim"], "x feature dim does not match prepared params"
    dim_p = prepared["dim_p"]
    w1, b1, w2, b2, w3, b3, w4, b4 = prepared["weights"]
    info = _device_info()
    w_isz = w1.dtype.itemsize
    out_dtype = x.dtype if out_dtype is None else out_dtype
    x_isz = x.dtype.itemsize
    out_isz = jnp.dtype(out_dtype).itemsize

    if dim_p != dim:
        x = jnp.pad(x, ((0, 0), (0, dim_p - dim)))

    # ---- batch-tile selection ------------------------------------------------
    B8 = _round_up(B, 8)
    if bm is not None:
        bm_eff = min(_round_up(bm, 8), B8)
    else:
        bm_target = info["bm_target"]
        if (not prepared["tiled"]) and dim_p <= 512 and bm_target >= 256:
            bm_target = 512                     # tiny layers: bigger M, fewer steps
        bm_eff = min(bm_target, B8)
        if info["num_tc"] == 2 and B8 >= 256:
            # v7x: >= 2 steps/core when possible, never below 128-row tiles.
            steps = 4 if B8 >= 512 else 2
            bm_eff = min(bm_eff, max(128, _round_up(pl.cdiv(B8, steps), 8)))
        bm_eff = _round_up(bm_eff, 8)
        if not prepared["tiled"]:
            while bm_eff > 128 and _vmem_est_fused(
                    bm_eff, dim_p, w_isz, x_isz, out_isz) > info["vmem_budget"]:
                bm_eff = max(128, _round_up(bm_eff // 2, 8))

    Bp = _round_up(B, bm_eff)
    if Bp != B:
        x = jnp.pad(x, ((0, Bp - B), (0, 0)))
    nb = Bp // bm_eff

    vmem_full = pl.BlockSpec(memory_space=pltpu.MemorySpace.VMEM)
    cap = info["vmem_cap"]

    if not prepared["tiled"]:
        # ---- fused single-kernel path (weights resident) ----------------------
        flops = 2 * Bp * (dim_p * H1 + H1 * H2 + H2 * H1 + H1 * dim_p)
        bytes_acc = (Bp * dim_p * x_isz
                     + w_isz * (dim_p * H1 + H1 * H2 + H2 * H1 + H1 * dim_p)
                     + 4 * (H1 + H2 + H1 + dim_p)
                     + Bp * dim_p * out_isz + Bp * H2 * out_isz)
        est = _vmem_est_fused(bm_eff, dim_p, w_isz, x_isz, out_isz)

        recon, z = pl.pallas_call(
            _fused_kernel,
            grid=(nb,),
            in_specs=[
                pl.BlockSpec((bm_eff, dim_p), lambda i: (i, 0)),   # x tile
                vmem_full, vmem_full,                               # w1, b1
                vmem_full, vmem_full,                               # w2, b2
                vmem_full, vmem_full,                               # w3, b3
                vmem_full, vmem_full,                               # w4, b4
            ],
            out_specs=[
                pl.BlockSpec((bm_eff, dim_p), lambda i: (i, 0)),   # recon (lane-dense)
                pl.BlockSpec((bm_eff, H2), lambda i: (i, 0)),      # z
            ],
            out_shape=[
                jax.ShapeDtypeStruct((Bp, dim_p), out_dtype),
                jax.ShapeDtypeStruct((Bp, H2), out_dtype),
            ],
            compiler_params=pltpu.CompilerParams(
                dimension_semantics=("parallel",),
                vmem_limit_bytes=_vmem_limit_bytes(est, cap)),
            cost_estimate=pl.CostEstimate(flops=int(flops), transcendentals=0,
                                          bytes_accessed=int(bytes_acc)),
        )(x, w1, b1, w2, b2, w3, b3, w4, b4)
        return recon[:B, :dim], z[:B, :]

    # ---- large-dim path: encode (K-tiled) + decode (N-tiled) ------------------
    dt = prepared["dim_tile"]
    kt = dim_p // dt

    enc_flops = 2 * Bp * (dim_p * H1 + H1 * H2)
    enc_bytes = (Bp * dim_p * x_isz + w_isz * (dim_p * H1 + H1 * H2)
                 + 4 * (H1 + H2) + Bp * H2 * out_isz)
    enc_est = _vmem_est_encode(bm_eff, dt, w_isz, x_isz, out_isz)

    z = pl.pallas_call(
        _encode_kernel,
        grid=(nb, kt),
        in_specs=[
            pl.BlockSpec((bm_eff, dt), lambda i, k: (i, k)),       # x column tile
            pl.BlockSpec((dt, H1), lambda i, k: (k, 0)),           # w1 K-tile (streamed)
            vmem_full,                                             # b1
            vmem_full, vmem_full,                                  # w2, b2
        ],
        out_specs=pl.BlockSpec((bm_eff, H2), lambda i, k: (i, 0)),
        out_shape=jax.ShapeDtypeStruct((Bp, H2), out_dtype),
        scratch_shapes=[pltpu.VMEM((bm_eff, H1), jnp.float32)],    # fc1 accumulator
        compiler_params=pltpu.CompilerParams(
            dimension_semantics=("parallel", "arbitrary"),
            vmem_limit_bytes=_vmem_limit_bytes(enc_est, cap)),
        cost_estimate=pl.CostEstimate(flops=int(enc_flops), transcendentals=0,
                                      bytes_accessed=int(enc_bytes)),
    )(x, w1, b1, w2, b2)

    dec_flops = 2 * Bp * (H2 * H1 + H1 * dim_p)
    dec_bytes = (Bp * H2 * out_isz + w_isz * (H2 * H1 + H1 * dim_p)
                 + 4 * (H1 + dim_p) + Bp * dim_p * out_isz)
    dec_est = _vmem_est_decode(bm_eff, dt, w_isz, out_isz, out_isz)

    recon = pl.pallas_call(
        _decode_kernel,
        grid=(nb, kt),
        in_specs=[
            pl.BlockSpec((bm_eff, H2), lambda i, j: (i, 0)),       # z tile
            vmem_full, vmem_full,                                  # w3, b3
            pl.BlockSpec((H1, dt), lambda i, j: (0, j)),           # w4 N-tile (streamed)
            pl.BlockSpec((1, dt), lambda i, j: (0, j)),            # b4 N-tile
        ],
        out_specs=pl.BlockSpec((bm_eff, dt), lambda i, j: (i, j)), # recon column tile
        out_shape=jax.ShapeDtypeStruct((Bp, dim_p), out_dtype),
        scratch_shapes=[pltpu.VMEM((bm_eff, H1), prepared["compute_dtype"])],  # h3 cache
        compiler_params=pltpu.CompilerParams(
            dimension_semantics=("parallel", "arbitrary"),
            vmem_limit_bytes=_vmem_limit_bytes(dec_est, cap)),
        cost_estimate=pl.CostEstimate(flops=int(dec_flops), transcendentals=0,
                                      bytes_accessed=int(dec_bytes)),
    )(z, w3, b3, w4, b4)

    return recon[:B, :dim], z[:B, :]


# --------------------------------------------------------------------------
# Test scaffolding
# --------------------------------------------------------------------------
def init_ae_params(key, dim, dtype=jnp.float32):
    """Deterministic synthetic params, shapes matching the AE's nn.Linear layers."""
    sizes = [(dim, H1), (H1, H2), (H2, H1), (H1, dim)]
    params = []
    for fan_in, fan_out in sizes:
        kw, kb, key = jax.random.split(key, 3)
        bound = 1.0 / jnp.sqrt(fan_in)
        # stored as (in, out) == transpose of PyTorch's (out, in) weight
        w = jax.random.uniform(kw, (fan_in, fan_out), dtype, -bound, bound)
        b = jax.random.uniform(kb, (1, fan_out), dtype, -bound, bound)
        params += [w, b]
    return tuple(params)


def _jax_reference(x, params):
    """Plain-JAX reference with the same bf16-weight / f32-accumulate numerics."""
    w1, b1, w2, b2, w3, b3, w4, b4 = params
    bf = jnp.bfloat16

    def dense_relu(a, w, b):
        return jnp.maximum(
            jnp.dot(a.astype(bf), w.astype(bf),
                    preferred_element_type=jnp.float32) + b, 0.0)

    h1 = dense_relu(x, w1, b1)
    z = dense_relu(h1, w2, b2)
    h3 = dense_relu(z, w3, b3)
    return dense_relu(h3, w4, b4), z


if __name__ == "__main__":
    key = jax.random.PRNGKey(0)

    # Case 1: small, aligned shapes (fused single-kernel path).
    B, dim = 8, 256
    kx, kp, key = jax.random.split(key, 3)
    x = jax.random.normal(kx, (B, dim), jnp.float32)
    params = init_ae_params(kp, dim)
    prepared = prepare_ae_params(params)            # pad + bf16 cast hoisted out
    recon, z = ae_forward(x, prepared)
    jax.block_until_ready((recon, z))
    recon_ref, z_ref = _jax_reference(x, params)
    assert recon.shape == (B, dim) and z.shape == (B, H2)
    assert jnp.allclose(z, z_ref, atol=1e-2, rtol=1e-2)
    assert jnp.allclose(recon, recon_ref, atol=1e-2, rtol=1e-2)

    # Case 2: ragged batch + non-multiple-of-128 dim (padding path, fused).
    B2, dim2 = 48, 200
    kx2, kp2, key = jax.random.split(key, 3)
    x2 = jax.random.normal(kx2, (B2, dim2), jnp.float32)
    params2 = init_ae_params(kp2, dim2)
    prepared2 = prepare_ae_params(params2)
    recon2, z2 = ae_forward(x2, prepared2)
    jax.block_until_ready((recon2, z2))
    recon2_ref, z2_ref = _jax_reference(x2, params2)
    assert recon2.shape == (B2, dim2) and z2.shape == (B2, H2)
    assert jnp.allclose(z2, z2_ref, atol=1e-2, rtol=1e-2)
    assert jnp.allclose(recon2, recon2_ref, atol=1e-2, rtol=1e-2)

    # Case 3: forced encode/decode split (exercises the large-`dim` v7x path
    # — fc1 K-tiling and fc4 N-tiling — at a small, fast scale).
    B3, dim3 = 40, 640
    kx3, kp3, key = jax.random.split(key, 3)
    x3 = jax.random.normal(kx3, (B3, dim3), jnp.float32)
    params3 = init_ae_params(kp3, dim3)
    prepared3 = prepare_ae_params(params3, force_tiled=True)
    recon3, z3 = ae_forward(x3, prepared3)
    jax.block_until_ready((recon3, z3))
    recon3_ref, z3_ref = _jax_reference(x3, params3)
    assert recon3.shape == (B3, dim3) and z3.shape == (B3, H2)
    assert jnp.allclose(z3, z3_ref, atol=1e-2, rtol=1e-2)
    assert jnp.allclose(recon3, recon3_ref, atol=1e-2, rtol=1e-2)

    print("KERNEL_OK")
</pallas_src>

<mosaic_0001>
module attributes {stable_mosaic.version = 11 : i64} {
  func.func @_fused_kernel(%arg0: i32, %arg1: memref<8x256xf32, #tpu.memory_space<vmem>>, %arg2: memref<256x512xbf16, #tpu.memory_space<vmem>>, %arg3: memref<1x512xf32, #tpu.memory_space<vmem>>, %arg4: memref<512x128xbf16, #tpu.memory_space<vmem>>, %arg5: memref<1x128xf32, #tpu.memory_space<vmem>>, %arg6: memref<128x512xbf16, #tpu.memory_space<vmem>>, %arg7: memref<1x512xf32, #tpu.memory_space<vmem>>, %arg8: memref<512x256xbf16, #tpu.memory_space<vmem>>, %arg9: memref<1x256xf32, #tpu.memory_space<vmem>>, %arg10: memref<8x256xf32, #tpu.memory_space<vmem>>, %arg11: memref<8x128xf32, #tpu.memory_space<vmem>>) attributes {dimension_semantics = [#tpu.dimension_semantics<parallel>], iteration_bounds = array<i64: 1>, scalar_prefetch = 0 : i64, scratch_operands = 0 : i64, tpu.core_type = #tpu.core_type<tc>, window_params = [{transform_indices = @transform_0, window_bounds = array<i64: 8, 256>}, {pipeline_mode = #tpu.pipeline_mode<synchronous>, transform_indices = @transform_1, window_bounds = array<i64: 256, 512>}, {pipeline_mode = #tpu.pipeline_mode<synchronous>, transform_indices = @transform_2, window_bounds = array<i64: 1, 512>}, {pipeline_mode = #tpu.pipeline_mode<synchronous>, transform_indices = @transform_3, window_bounds = array<i64: 512, 128>}, {pipeline_mode = #tpu.pipeline_mode<synchronous>, transform_indices = @transform_4, window_bounds = array<i64: 1, 128>}, {pipeline_mode = #tpu.pipeline_mode<synchronous>, transform_indices = @transform_5, window_bounds = array<i64: 128, 512>}, {pipeline_mode = #tpu.pipeline_mode<synchronous>, transform_indices = @transform_6, window_bounds = array<i64: 1, 512>}, {pipeline_mode = #tpu.pipeline_mode<synchronous>, transform_indices = @transform_7, window_bounds = array<i64: 512, 256>}, {pipeline_mode = #tpu.pipeline_mode<synchronous>, transform_indices = @transform_8, window_bounds = array<i64: 1, 256>}, {transform_indices = @transform_9, window_bounds = array<i64: 8, 256>}, {transform_indices = @transform_10, window_bounds = array<i64: 8, 128>}]} {
    %c0 = arith.constant 0 : index
    %c0_0 = arith.constant 0 : index
    %0 = vector.load %arg1[%c0, %c0_0] : memref<8x256xf32, #tpu.memory_space<vmem>>, vector<8x256xf32>
    %1 = arith.truncf %0 : vector<8x256xf32> to vector<8x256xbf16>
    %c0_1 = arith.constant 0 : index
    %c0_2 = arith.constant 0 : index
    %2 = vector.load %arg2[%c0_1, %c0_2] : memref<256x512xbf16, #tpu.memory_space<vmem>>, vector<256x512xbf16>
    %cst = arith.constant dense<0.000000e+00> : vector<8x512xf32>
    %3 = tpu.matmul %1, %2, %cst {dimension_numbers = #tpu.dot_dimension_numbers<[1], [0], [0], [1], [0, 0, 1, 1], [], []>} : vector<8x256xbf16>, vector<256x512xbf16>, vector<8x512xf32> -> vector<8x512xf32>
    %c0_3 = arith.constant 0 : index
    %c0_4 = arith.constant 0 : index
    %4 = vector.load %arg3[%c0_3, %c0_4] : memref<1x512xf32, #tpu.memory_space<vmem>>, vector<1x512xf32>
    %5 = vector.broadcast %4 : vector<1x512xf32> to vector<8x512xf32>
    %6 = arith.addf %3, %5 : vector<8x512xf32>
    %cst_5 = arith.constant 0.000000e+00 : f32
    %7 = vector.broadcast %cst_5 : f32 to vector<8x512xf32>
    %8 = arith.maximumf %6, %7 : vector<8x512xf32>
    %9 = arith.truncf %8 : vector<8x512xf32> to vector<8x512xbf16>
    %c0_6 = arith.constant 0 : index
    %c0_7 = arith.constant 0 : index
    %10 = vector.load %arg4[%c0_6, %c0_7] : memref<512x128xbf16, #tpu.memory_space<vmem>>, vector<512x128xbf16>
    %cst_8 = arith.constant dense<0.000000e+00> : vector<8x128xf32>
    %11 = tpu.matmul %9, %10, %cst_8 {dimension_numbers = #tpu.dot_dimension_numbers<[1], [0], [0], [1], [0, 0, 1, 1], [], []>} : vector<8x512xbf16>, vector<512x128xbf16>, vector<8x128xf32> -> vector<8x128xf32>
    %c0_9 = arith.constant 0 : index
    %c0_10 = arith.constant 0 : index
    %12 = vector.load %arg5[%c0_9, %c0_10] : memref<1x128xf32, #tpu.memory_space<vmem>>, vector<1x128xf32>
    %13 = vector.broadcast %12 : vector<1x128xf32> to vector<8x128xf32>
    %14 = arith.addf %11, %13 : vector<8x128xf32>
    %cst_11 = arith.constant 0.000000e+00 : f32
    %15 = vector.broadcast %cst_11 : f32 to vector<8x128xf32>
    %16 = arith.maximumf %14, %15 : vector<8x128xf32>
    %c0_12 = arith.constant 0 : index
    %c0_13 = arith.constant 0 : index
    %17 = vector.load %arg11[%c0_12, %c0_13] : memref<8x128xf32, #tpu.memory_space<vmem>>, vector<8x128xf32>
    tpu.vector_store %arg11[%c0_12, %c0_13], %16 {strides = array<i32>} : memref<8x128xf32, #tpu.memory_space<vmem>>, vector<8x128xf32>,
    %18 = arith.truncf %16 : vector<8x128xf32> to vector<8x128xbf16>
    %c0_14 = arith.constant 0 : index
    %c0_15 = arith.constant 0 : index
    %19 = vector.load %arg6[%c0_14, %c0_15] : memref<128x512xbf16, #tpu.memory_space<vmem>>, vector<128x512xbf16>
    %cst_16 = arith.constant dense<0.000000e+00> : vector<8x512xf32>
    %20 = tpu.matmul %18, %19, %cst_16 {dimension_numbers = #tpu.dot_dimension_numbers<[1], [0], [0], [1], [0, 0, 1, 1], [], []>} : vector<8x128xbf16>, vector<128x512xbf16>, vector<8x512xf32> -> vector<8x512xf32>
    %c0_17 = arith.constant 0 : index
    %c0_18 = arith.constant 0 : index
    %21 = vector.load %arg7[%c0_17, %c0_18] : memref<1x512xf32, #tpu.memory_space<vmem>>, vector<1x512xf32>
    %22 = vector.broadcast %21 : vector<1x512xf32> to vector<8x512xf32>
    %23 = arith.addf %20, %22 : vector<8x512xf32>
    %cst_19 = arith.constant 0.000000e+00 : f32
    %24 = vector.broadcast %cst_19 : f32 to vector<8x512xf32>
    %25 = arith.maximumf %23, %24 : vector<8x512xf32>
    %26 = arith.truncf %25 : vector<8x512xf32> to vector<8x512xbf16>
    %c0_20 = arith.constant 0 : index
    %c0_21 = arith.constant 0 : index
    %27 = vector.load %arg8[%c0_20, %c0_21] : memref<512x256xbf16, #tpu.memory_space<vmem>>, vector<512x256xbf16>
    %cst_22 = arith.constant dense<0.000000e+00> : vector<8x256xf32>
    %28 = tpu.matmul %26, %27, %cst_22 {dimension_numbers = #tpu.dot_dimension_numbers<[1], [0], [0], [1], [0, 0, 1, 1], [], []>} : vector<8x512xbf16>, vector<512x256xbf16>, vector<8x256xf32> -> vector<8x256xf32>
    %c0_23 = arith.constant 0 : index
    %c0_24 = arith.constant 0 : index
    %29 = vector.load %arg9[%c0_23, %c0_24] : memref<1x256xf32, #tpu.memory_space<vmem>>, vector<1x256xf32>
    %30 = vector.broadcast %29 : vector<1x256xf32> to vector<8x256xf32>
    %31 = arith.addf %28, %30 : vector<8x256xf32>
    %cst_25 = arith.constant 0.000000e+00 : f32
    %32 = vector.broadcast %cst_25 : f32 to vector<8x256xf32>
    %33 = arith.maximumf %31, %32 : vector<8x256xf32>
    %c0_26 = arith.constant 0 : index
    %c0_27 = arith.constant 0 : index
    %34 = vector.load %arg10[%c0_26, %c0_27] : memref<8x256xf32, #tpu.memory_space<vmem>>, vector<8x256xf32>
    tpu.vector_store %arg10[%c0_26, %c0_27], %33 {strides = array<i32>} : memref<8x256xf32, #tpu.memory_space<vmem>>, vector<8x256xf32>,
    return
  }
  func.func @transform_0(%arg0: i32) -> (i32, i32) {
    %c0_i32 = arith.constant 0 : i32
    %c0_i32_0 = arith.constant 0 : i32
    return %arg0, %c0_i32 : i32, i32
  }
  func.func @transform_1(%arg0: i32) -> (i32, i32) {
    %c0_i32 = arith.constant 0 : i32
    %c0_i32_0 = arith.constant 0 : i32
    %c0_i32_1 = arith.constant 0 : i32
    return %c0_i32, %c0_i32_0 : i32, i32
  }
  func.func @transform_2(%arg0: i32) -> (i32, i32) {
    %c0_i32 = arith.constant 0 : i32
    %c0_i32_0 = arith.constant 0 : i32
    %c0_i32_1 = arith.constant 0 : i32
    return %c0_i32, %c0_i32_0 : i32, i32
  }
  func.func @transform_3(%arg0: i32) -> (i32, i32) {
    %c0_i32 = arith.constant 0 : i32
    %c0_i32_0 = arith.constant 0 : i32
    %c0_i32_1 = arith.constant 0 : i32
    return %c0_i32, %c0_i32_0 : i32, i32
  }
  func.func @transform_4(%arg0: i32) -> (i32, i32) {
    %c0_i32 = arith.constant 0 : i32
    %c0_i32_0 = arith.constant 0 : i32
    %c0_i32_1 = arith.constant 0 : i32
    return %c0_i32, %c0_i32_0 : i32, i32
  }
  func.func @transform_5(%arg0: i32) -> (i32, i32) {
    %c0_i32 = arith.constant 0 : i32
    %c0_i32_0 = arith.constant 0 : i32
    %c0_i32_1 = arith.constant 0 : i32
    return %c0_i32, %c0_i32_0 : i32, i32
  }
  func.func @transform_6(%arg0: i32) -> (i32, i32) {
    %c0_i32 = arith.constant 0 : i32
    %c0_i32_0 = arith.constant 0 : i32
    %c0_i32_1 = arith.constant 0 : i32
    return %c0_i32, %c0_i32_0 : i32, i32
  }
  func.func @transform_7(%arg0: i32) -> (i32, i32) {
    %c0_i32 = arith.constant 0 : i32
    %c0_i32_0 = arith.constant 0 : i32
    %c0_i32_1 = arith.constant 0 : i32
    return %c0_i32, %c0_i32_0 : i32, i32
  }
  func.func @transform_8(%arg0: i32) -> (i32, i32) {
    %c0_i32 = arith.constant 0 : i32
    %c0_i32_0 = arith.constant 0 : i32
    %c0_i32_1 = arith.constant 0 : i32
    return %c0_i32, %c0_i32_0 : i32, i32
  }
  func.func @transform_9(%arg0: i32) -> (i32, i32) {
    %c0_i32 = arith.constant 0 : i32
    %c0_i32_0 = arith.constant 0 : i32
    return %arg0, %c0_i32 : i32, i32
  }
  func.func @transform_10(%arg0: i32) -> (i32, i32) {
    %c0_i32 = arith.constant 0 : i32
    %c0_i32_0 = arith.constant 0 : i32
    return %arg0, %c0_i32 : i32, i32
  }
}

</mosaic_0001>

<bundles_post_ra>
// kernel: tpu_custom_call.1
= control target key start
LH: loop header
LB: loop body
LE: loop exit
PB: predicated region body
PF: predicated region fallthrough
CT: control target
= control target key end

     0   :  { %16 = vsyncpa [#allocation3], 0  ;;  %s2608_s0 = inlined_call_operand.hbm [shape: f32[8,256], index: 0, kind: input, shape index: {}]   ;;  %s2609_s1 = inlined_call_operand.hbm [shape: bf16[256,512], index: 1, kind: input, shape index: {}]   ;;  %s2610_s2 = inlined_call_operand.hbm [shape: f32[1,512], index: 2, kind: input, shape index: {}]   ;;  %s2611_s3 = inlined_call_operand.hbm [shape: bf16[512,128], index: 3, kind: input, shape index: {}]   ;;  %s2612_s4 = inlined_call_operand.vmem [shape: f32[1,128], index: 4, kind: input, shape index: {}]   ;;  %s2613_s5 = inlined_call_operand.hbm [shape: bf16[128,512], index: 5, kind: input, shape index: {}]   ;;  %s2614_s6 = inlined_call_operand.vmem [shape: f32[1,512], index: 6, kind: input, shape index: {}]   ;;  %s2615_s7 = inlined_call_operand.hbm [shape: bf16[512,256], index: 7, kind: input, shape index: {}]   ;;  %s2616_s8 = inlined_call_operand.vmem [shape: f32[1,256], index: 8, kind: input, shape index: {}]   ;;  %s2617_s9 = inlined_call_operand.hbm [shape: f32[8,256], index: 9, kind: output, shape index: {0}]   ;;  %s2618_s10 = inlined_call_operand.hbm [shape: f32[8,128], index: 10, kind: output, shape index: {1}]  }
   0x1   :  { %17 = vsyncpa [#allocation6], 0 }
   0x2   :  { %18 = vsyncpa [#allocation9], 0 }
   0x3   :  { %19 = vsyncpa [#allocation12], 0 }
   0x4   :  { %20 = vsyncpa [#allocation4], 0 }
   0x5   :  { %21 = vsyncpa [#allocation15], 0  ;;  %s2475_s13 = smov [#allocation5]  }
   0x6   :  { %s37_s14 = sshll.u32 %s2475_s13, 4  ;;  %s38_s14 = int_to_ptr.vmem [resolvable:$true] %s37_s14 }
   0x7   :  { %s2311_s15 = scalar_lea.vmem %s38_s14, 8192  ;;  %p2316_p1 = scmp.lt.s32.totalorder %s38_s14, %s38_s14 }
   0x8   :  { %p2312_p0 = scmp.ne.s32.totalorder %s38_s14, %s2311_s15  ;;  %p2317_p2 = scmp.lt.s32.totalorder %s2311_s15, %s2311_s15 }
   0xa   :  { %p2318_p3 = por %p2317_p2, %p2316_p1 }
   0xc   :  { %p2319_p4 = pnand %p2318_p3, %p2312_p0 }
   0xe   :  { %2322 = shalt.err (!%p2319_p4)
}
   0xf   :  { %s2476_s16 = smov 256   ;;  %s2477_s17 = smov 16  }
  0x10   :  { %43 = dma.hbm_to_vmem [thread:$0]  %s2609_s1, 8192, %s38_s14, [#allocation6], %s2476_s16, %s2476_s16, %s2477_s17  }
  0x11   :  { %s2478_s20 = smov [#allocation8]  }
  0x12   :  { %s59_s21 = sshll.u32 %s2478_s20, 4  ;;  %s60_s21 = int_to_ptr.vmem [resolvable:$true] %s59_s21 }
  0x13   :  { %s2331_s22 = scalar_lea.vmem %s60_s21, 4096  ;;  %p2336_p6 = scmp.lt.s32.totalorder %s60_s21, %s60_s21 }
  0x14   :  { %p2332_p5 = scmp.ne.s32.totalorder %s60_s21, %s2331_s22  ;;  %p2337_p7 = scmp.lt.s32.totalorder %s2331_s22, %s2331_s22 }
  0x16   :  { %p2338_p8 = por %p2337_p7, %p2336_p6 }
  0x18   :  { %p2339_p9 = pnand %p2338_p8, %p2332_p5 }
  0x1a   :  { %2342 = shalt.err (!%p2339_p9)
}
  0x1b   :  { %s2479_s23 = smov 64   ;;  %s2480_s24 = smov 4  }
  0x1c   :  { %65 = dma.hbm_to_vmem [thread:$0]  %s2611_s3, 4096, %s60_s21, [#allocation9], %s2479_s23, %s2479_s23, %s2480_s24  }
  0x1d   :  { %s2481_s27 = smov [#allocation2]   ;;  %s2482_s29 = smov [#allocation7]  }
  0x1e   :  { %s28_s28 = sshll.u32 %s2481_s27, 4  ;;  %s50_s1 = sshll.u32 %s2482_s29, 4  ;;  %s29_s28 = int_to_ptr.vmem [resolvable:$true] %s28_s28  ;;  %s51_s1 = int_to_ptr.vmem [resolvable:$true] %s50_s1 }
  0x1f   :  { %s2351_s30 = scalar_lea.vmem %s29_s28, 256  ;;  %p2356_p11 = scmp.lt.s32.totalorder %s29_s28, %s29_s28 }
  0x20   :  { %p2352_p10 = scmp.ne.s32.totalorder %s29_s28, %s2351_s30  ;;  %p2357_p12 = scmp.lt.s32.totalorder %s2351_s30, %s2351_s30 }
  0x22   :  { %p2358_p13 = por %p2357_p12, %p2356_p11 }
  0x24   :  { %p2359_p0 = pnand %p2358_p13, %p2352_p10 }
  0x26   :  { %2362 = shalt.err (!%p2359_p0)
}
  0x27   :  { %31 = dma.hbm_to_vmem [thread:$0]  %s2608_s0, 256, %s29_s28, [#allocation3]  }
  0x28   :  { %s2371_s13 = scalar_lea.vmem %s51_s1, 64  ;;  %p2376_p2 = scmp.lt.s32.totalorder %s51_s1, %s51_s1 }
  0x29   :  { %p2372_p1 = scmp.ne.s32.totalorder %s51_s1, %s2371_s13  ;;  %p2377_p3 = scmp.lt.s32.totalorder %s2371_s13, %s2371_s13 }
  0x2b   :  { %p2378_p4 = por %p2377_p3, %p2376_p2 }
  0x2d   :  { %p2379_p5 = pnand %p2378_p4, %p2372_p1 }
  0x2f   :  { %2382 = shalt.err (!%p2379_p5)
}
  0x30   :  { %53 = dma.hbm_to_vmem [thread:$0]  %s2610_s2, 64, %s51_s1, [#allocation6]  }
  0x31   :  { %s2483_s15 = smov [#allocation10]   ;;  %s2484_s19 = smov [#allocation11]  }
  0x32   :  { %s73_s18 = sshll.u32 %s2483_s15, 4  ;;  %s87_s20 = sshll.u32 %s2484_s19, 4  ;;  %s74_s18 = int_to_ptr.vmem [resolvable:$true] %s73_s18  ;;  %s88_s20 = int_to_ptr.vmem [resolvable:$true] %s87_s20 }
  0x33   :  { %s2391_s21 = scalar_lea.vmem %s74_s18, 4096  ;;  %p2396_p7 = scmp.lt.s32.totalorder %s74_s18, %s74_s18 }
  0x34   :  { %p2392_p6 = scmp.ne.s32.totalorder %s74_s18, %s2391_s21  ;;  %p2397_p8 = scmp.lt.s32.totalorder %s2391_s21, %s2391_s21 }
  0x36   :  { %p2398_p9 = por %p2397_p8, %p2396_p7 }
  0x38   :  { %p2399_p10 = pnand %p2398_p9, %p2392_p6 }
  0x3a   :  { %2402 = shalt.err (!%p2399_p10)
}
  0x3b   :  { %79 = dma.hbm_to_vmem [thread:$0]  %s2613_s5, 4096, %s74_s18, [#allocation9], %s2476_s16, %s2476_s16, %s2477_s17  }
  0x3c   :  { %s2411_s2 = scalar_lea.vmem %s88_s20, 8192  ;;  %p2416_p12 = scmp.lt.s32.totalorder %s88_s20, %s88_s20 }
  0x3d   :  { %p2412_p11 = scmp.ne.s32.totalorder %s88_s20, %s2411_s2  ;;  %p2417_p13 = scmp.lt.s32.totalorder %s2411_s2, %s2411_s2 }
  0x3f   :  { %p2418_p0 = por %p2417_p13, %p2416_p12 }
  0x41   :  { %p2419_p1 = pnand %p2418_p0, %p2412_p11 }
  0x43   :  { %2422 = shalt.err (!%p2419_p1)
}
  0x44   :  { %s2485_s23 = smov 128   ;;  %s2486_s24 = smov 8  }
  0x45   :  { %93 = dma.hbm_to_vmem [thread:$0]  %s2615_s7, 8192, %s88_s20, [#allocation12], %s2485_s23, %s2485_s23, %s2486_s24  }
  0x46   :  { %2463 = dma.done.wait [#allocation3], 256  }
  0x47   :  { %2464 = vsyncadd [#allocation3], 4294967040 }
  0x48   :  { %2465 = dma.done.wait [#allocation6], 8256  }
  0x49   :  { %2466 = vsyncadd [#allocation6], 4294959040 }
  0x4a   :  { %2467 = dma.done.wait [#allocation9], 8192  }
  0x4b   :  { %2468 = vsyncadd [#allocation9], 4294959104 }
  0x4c   :  { %2469 = dma.done.wait [#allocation12], 8192  }
  0x4d   :  { %2470 = vsyncadd [#allocation12], 4294959104  ;;  %v2031_v0 = vld [vmem:[#allocation5 + $0xe4] ss:$16 sps:$4 sm:$0xff]   ;;  %v2033_v1 = vld [vmem:[#allocation5 + $0xec] ss:$16 sps:$4 sm:$0xff]  }
  0x4e   :  { %525 = vmatprep.subr.bf16.mxu0 %v2031_v0  ;;  %v2035_v2 = vld [vmem:[#allocation5 + $0xe0] ss:$16 sps:$4 sm:$0xff]   ;;  %v2036_v3 = vld [vmem:[#allocation5 + $0xe8] ss:$16 sps:$4 sm:$0xff]   ;;  %566 = vmatprep.subr.bf16.mxu1 %v2033_v1  ;;  %v2037_v4 = vld [vmem:[#allocation5 + $0xc4] ss:$16 sps:$4 sm:$0xff]  }
  0x4f   :  { %526 = vmatpush1.bf16.msra.mxu0 %v2035_v2  ;;  %567 = vmatpush1.bf16.msra.mxu1 %v2036_v3  ;;  %v2039_v5 = vld [vmem:[#allocation5 + $0xcc] ss:$16 sps:$4 sm:$0xff]   ;;  %v2041_v6 = vld [vmem:[#allocation5 + $0xc0] ss:$16 sps:$4 sm:$0xff]   ;;  %v2042_v7 = vld [vmem:[#allocation5 + $0xc8] ss:$16 sps:$4 sm:$0xff]  }
  0x50   :  { %527 = vmatprep.subr.bf16.mxu0 %v2037_v4  ;;  %568 = vmatprep.subr.bf16.mxu1 %v2039_v5  ;;  %v2043_v8 = vld [vmem:[#allocation5 + $0xa4] ss:$16 sps:$4 sm:$0xff]   ;;  %v2045_v9 = vld [vmem:[#allocation5 + $0xac] ss:$16 sps:$4 sm:$0xff]   ;;  %v2047_v10 = vld [vmem:[#allocation5 + $0xa0] ss:$16 sps:$4 sm:$0xff]  }
  0x51   :  { %v2048_v11 = vld [vmem:[#allocation5 + $0xa8] ss:$16 sps:$4 sm:$0xff]   ;;  %v2049_v12 = vld [vmem:[#allocation5 + $0x84] ss:$16 sps:$4 sm:$0xff]   ;;  %v2051_v13 = vld [vmem:[#allocation5 + $0x8c] ss:$16 sps:$4 sm:$0xff]  }
  0x52   :  { %v2053_v14 = vld [vmem:[#allocation5 + $0x80] ss:$16 sps:$4 sm:$0xff]   ;;  %v2054_v15 = vld [vmem:[#allocation5 + $0x88] ss:$16 sps:$4 sm:$0xff]   ;;  %v2055_v16 = vld [vmem:[#allocation5 + $0x64] ss:$16 sps:$4 sm:$0xff]  }
  0x53   :  { %528 = vmatpush1.bf16.msra.mxu0 %v2041_v6  ;;  %569 = vmatpush1.bf16.msra.mxu1 %v2042_v7  ;;  %v2057_v17 = vld [vmem:[#allocation5 + $0x6c] ss:$16 sps:$4 sm:$0xff]   ;;  %v2059_v18 = vld [vmem:[#allocation5 + $0x60] ss:$16 sps:$4 sm:$0xff]   ;;  %v2060_v19 = vld [vmem:[#allocation5 + $0x68] ss:$16 sps:$4 sm:$0xff]  }
  0x54   :  { %529 = vmatprep.subr.bf16.mxu0 %v2043_v8  ;;  %570 = vmatprep.subr.bf16.mxu1 %v2045_v9  ;;  %v2061_v20 = vld [vmem:[#allocation5 + $0x44] ss:$16 sps:$4 sm:$0xff]   ;;  %v2063_v21 = vld [vmem:[#allocation5 + $0x4c] ss:$16 sps:$4 sm:$0xff]   ;;  %v2065_v22 = vld [vmem:[#allocation5 + $0x40] ss:$16 sps:$4 sm:$0xff]  }
  0x55   :  { %v2066_v23 = vld [vmem:[#allocation5 + $0x48] ss:$16 sps:$4 sm:$0xff]   ;;  %v2067_v24 = vld [vmem:[#allocation5 + $0x24] ss:$16 sps:$4 sm:$0xff]   ;;  %v2069_v25 = vld [vmem:[#allocation5 + $0x2c] ss:$16 sps:$4 sm:$0xff]  }
  0x56   :  { %v2071_v26 = vld [vmem:[#allocation5 + $0x20] ss:$16 sps:$4 sm:$0xff]   ;;  %v2072_v27 = vld [vmem:[#allocation5 + $0x28] ss:$16 sps:$4 sm:$0xff]   ;;  %v2073_v28 = vld [vmem:[#allocation5 + $0x4] ss:$16 sps:$4 sm:$0xff]  }
  0x57   :  { %530 = vmatpush1.bf16.msra.mxu0 %v2047_v10  ;;  %571 = vmatpush1.bf16.msra.mxu1 %v2048_v11  ;;  %v2075_v29 = vld [vmem:[#allocation5 + $0xc] ss:$16 sps:$4 sm:$0xff]   ;;  %v2077_v30 = vld [vmem:[#allocation5] ss:$16 sps:$4 sm:$0xff]   ;;  %v2078_v31 = vld [vmem:[#allocation5 + $0x8] ss:$16 sps:$4 sm:$0xff]  }
  0x58   :  { %531 = vmatprep.subr.bf16.mxu0 %v2049_v12  ;;  %572 = vmatprep.subr.bf16.mxu1 %v2051_v13  ;;  %v2079_v32 = vld [vmem:[#allocation5 + $0x1e4] ss:$16 sps:$4 sm:$0xff]   ;;  %v2081_v33 = vld [vmem:[#allocation5 + $0x1ec] ss:$16 sps:$4 sm:$0xff]   ;;  %v2083_v34 = vld [vmem:[#allocation5 + $0x1e0] ss:$16 sps:$4 sm:$0xff]  }
  0x59   :  { %v2084_v35 = vld [vmem:[#allocation5 + $0x1e8] ss:$16 sps:$4 sm:$0xff]   ;;  %v2085_v36 = vld [vmem:[#allocation5 + $0x1c4] ss:$16 sps:$4 sm:$0xff]   ;;  %v2087_v37 = vld [vmem:[#allocation5 + $0x1cc] ss:$16 sps:$4 sm:$0xff]  }
  0x5a   :  { %v2089_v38 = vld [vmem:[#allocation5 + $0x1c0] ss:$16 sps:$4 sm:$0xff]   ;;  %v2090_v39 = vld [vmem:[#allocation5 + $0x1c8] ss:$16 sps:$4 sm:$0xff]   ;;  %v2091_v40 = vld [vmem:[#allocation5 + $0x1a4] ss:$16 sps:$4 sm:$0xff]  }
  0x5b   :  { %532 = vmatpush1.bf16.msra.mxu0 %v2053_v14  ;;  %573 = vmatpush1.bf16.msra.mxu1 %v2054_v15  ;;  %v2093_v41 = vld [vmem:[#allocation5 + $0x1ac] ss:$16 sps:$4 sm:$0xff]   ;;  %v2095_v42 = vld [vmem:[#allocation5 + $0x1a0] ss:$16 sps:$4 sm:$0xff]   ;;  %v2096_v43 = vld [vmem:[#allocation5 + $0x1a8] ss:$16 sps:$4 sm:$0xff]  }
  0x5c   :  { %533 = vmatprep.subr.bf16.mxu0 %v2055_v16  ;;  %574 = vmatprep.subr.bf16.mxu1 %v2057_v17  ;;  %v2097_v44 = vld [vmem:[#allocation5 + $0x184] ss:$16 sps:$4 sm:$0xff]   ;;  %v2099_v45 = vld [vmem:[#allocation5 + $0x18c] ss:$16 sps:$4 sm:$0xff]   ;;  %v2101_v46 = vld [vmem:[#allocation5 + $0x180] ss:$16 sps:$4 sm:$0xff]  }
  0x5d   :  { %v116_v47 = vld [vmem:[#allocation2 + $0x8] sm:$0xff]  ;;  %v2103_v50 = vld [vmem:[#allocation5 + $0x164] ss:$16 sps:$4 sm:$0xff]   ;;  %v2107_v52 = vld [vmem:[#allocation5 + $0x160] ss:$16 sps:$4 sm:$0xff]  }
  0x5e   :  { %v2102_v48 = vld [vmem:[#allocation5 + $0x188] ss:$16 sps:$4 sm:$0xff]   ;;  %v118_v49 = vpack.c.bf16 %v116_v47, %v116_v47  ;;  %v2105_v51 = vld [vmem:[#allocation5 + $0x16c] ss:$16 sps:$4 sm:$0xff]   ;;  %v2109_v54 = vld [vmem:[#allocation5 + $0x144] ss:$16 sps:$4 sm:$0xff]  }
  0x5f   :  { %534 = vmatpush1.bf16.msra.mxu0 %v2059_v18  ;;  %575 = vmatpush1.bf16.msra.mxu1 %v2060_v19  ;;  %v2108_v53 = vld [vmem:[#allocation5 + $0x168] ss:$16 sps:$4 sm:$0xff]   ;;  %v2111_v55 = vld [vmem:[#allocation5 + $0x14c] ss:$16 sps:$4 sm:$0xff]   ;;  %v2113_v56 = vld [vmem:[#allocation5 + $0x140] ss:$16 sps:$4 sm:$0xff]  }
  0x60   :  { %535 = vmatprep.subr.bf16.mxu0 %v2061_v20  ;;  %576 = vmatprep.subr.bf16.mxu1 %v2063_v21  ;;  %v2114_v57 = vld [vmem:[#allocation5 + $0x148] ss:$16 sps:$4 sm:$0xff]   ;;  %v2115_v58 = vld [vmem:[#allocation5 + $0x124] ss:$16 sps:$4 sm:$0xff]   ;;  %v2117_v59 = vld [vmem:[#allocation5 + $0x12c] ss:$16 sps:$4 sm:$0xff]  }
  0x61   :  { %557 = vmatprep.mubr.bf16.mxu0 %v118_v49  ;;  %598 = vmatprep.mubr.bf16.mxu1 %v118_v49  ;;  %v2119_v60 = vld [vmem:[#allocation5 + $0x120] ss:$16 sps:$4 sm:$0xff]   ;;  %v2120_v61 = vld [vmem:[#allocation5 + $0x128] ss:$16 sps:$4 sm:$0xff]   ;;  %v2121_v62 = vld [vmem:[#allocation5 + $0x104] ss:$16 sps:$4 sm:$0xff]  }
  0x62   :  { %v2123_v63 = vld [vmem:[#allocation5 + $0x10c] ss:$16 sps:$4 sm:$0xff]   ;;  %v2125_v0 = vld [vmem:[#allocation5 + $0x100] ss:$16 sps:$4 sm:$0xff]   ;;  %v2126_v1 = vld [vmem:[#allocation5 + $0x108] ss:$16 sps:$4 sm:$0xff]  }
  0x63   :  { %536 = vmatpush1.bf16.msra.mxu0 %v2065_v22  ;;  %577 = vmatpush1.bf16.msra.mxu1 %v2066_v23  ;;  %v115_v2 = vld [vmem:[#allocation2] sm:$0xff]  ;;  %v2127_v3 = vld [vmem:[#allocation8 + $0x78] sm:$0xff]   ;;  %v2139_v16 = vld [vmem:[#allocation8 + $0x60] sm:$0xff]  }
  0x64   :  { %537 = vmatprep.subr.bf16.mxu0 %v2067_v24  ;;  %578 = vmatprep.subr.bf16.mxu1 %v2069_v25  ;;  %v2128_v4 = vld [vmem:[#allocation8 + $0xf8] sm:$0xff]   ;;  %v117_v6 = vpack.c.bf16 %v115_v2, %v115_v2  ;;  %v2131_v8 = vld [vmem:[#allocation8 + $0x70] sm:$0xff]   ;;  %v2135_v12 = vld [vmem:[#allocation8 + $0x68] sm:$0xff]  }
  0x65   :  { %v2129_v5 = vld [vmem:[#allocation8 + $0x38] sm:$0xff]   ;;  %v2132_v9 = vld [vmem:[#allocation8 + $0xf0] sm:$0xff]   ;;  %v2136_v13 = vld [vmem:[#allocation8 + $0xe8] sm:$0xff]  }
  0x66   :  { %v2130_v7 = vld [vmem:[#allocation8 + $0xb8] sm:$0xff]   ;;  %v2133_v10 = vld [vmem:[#allocation8 + $0x30] sm:$0xff]   ;;  %v2137_v14 = vld [vmem:[#allocation8 + $0x28] sm:$0xff]  }
  0x67   :  { %538 = vmatpush1.bf16.msra.mxu0 %v2071_v26  ;;  %579 = vmatpush1.bf16.msra.mxu1 %v2072_v27  ;;  %v2134_v11 = vld [vmem:[#allocation8 + $0xb0] sm:$0xff]   ;;  %v2138_v15 = vld [vmem:[#allocation8 + $0xa8] sm:$0xff]   ;;  %v2140_v17 = vld [vmem:[#allocation8 + $0xe0] sm:$0xff]  }
  0x68   :  { %539 = vmatprep.subr.bf16.mxu0 %v2073_v28  ;;  %580 = vmatprep.subr.bf16.mxu1 %v2075_v29  ;;  %v2141_v18 = vld [vmem:[#allocation8 + $0x20] sm:$0xff]   ;;  %v2143_v20 = vld [vmem:[#allocation8 + $0x58] sm:$0xff]   ;;  %v2147_v24 = vld [vmem:[#allocation8 + $0x50] sm:$0xff]  }
  0x69   :  { %v2142_v19 = vld [vmem:[#allocation8 + $0xa0] sm:$0xff]   ;;  %v2144_v21 = vld [vmem:[#allocation8 + $0xd8] sm:$0xff]   ;;  %v2148_v25 = vld [vmem:[#allocation8 + $0xd0] sm:$0xff]  }
  0x6a   :  { %v2145_v22 = vld [vmem:[#allocation8 + $0x18] sm:$0xff]   ;;  %v2149_v26 = vld [vmem:[#allocation8 + $0x10] sm:$0xff]   ;;  %v2151_v28 = vld [vmem:[#allocation8 + $0x48] sm:$0xff]  }
  0x6b   :  { %540 = vmatpush1.bf16.msra.mxu0 %v2077_v30  ;;  %581 = vmatpush1.bf16.msra.mxu1 %v2078_v31  ;;  %v2146_v23 = vld [vmem:[#allocation8 + $0x98] sm:$0xff]   ;;  %v2150_v27 = vld [vmem:[#allocation8 + $0x90] sm:$0xff]   ;;  %v2152_v29 = vld [vmem:[#allocation8 + $0xc8] sm:$0xff]  }
  0x6c   :  { %541 = vmatprep.subr.bf16.mxu0 %v2079_v32  ;;  %582 = vmatprep.subr.bf16.mxu1 %v2081_v33  ;;  %v2153_v30 = vld [vmem:[#allocation8 + $0x8] sm:$0xff]   ;;  %v2155_v32 = vld [vmem:[#allocation8 + $0x40] sm:$0xff]  }
  0x6d   :  { %v2154_v31 = vld [vmem:[#allocation8 + $0x88] sm:$0xff]   ;;  %v2156_v33 = vld [vmem:[#allocation8 + $0xc0] sm:$0xff]  }
  0x6f   :  { %542 = vmatpush2.bf16.msra.mxu0 %v2083_v34  ;;  %583 = vmatpush2.bf16.msra.mxu1 %v2084_v35  ;;  %v2157_v34 = vld [vmem:[#allocation8] sm:$0xff]  }
  0x70   :  { %543 = vmatprep.subr.bf16.mxu0 %v2085_v36  ;;  %584 = vmatprep.subr.bf16.mxu1 %v2087_v37  ;;  %v2158_v35 = vld [vmem:[#allocation8 + $0x80] sm:$0xff]   ;;  %v2164_v37 = vld [vmem:[#allocation10 + $0xec] ss:$16 sps:$4 sm:$0xff]  }
  0x71   :  { %v2161_v36 = vld [vmem:[#allocation10 + $0xe4] ss:$16 sps:$4 sm:$0xff]  }
  0x73   :  { %544 = vmatpush2.bf16.msra.mxu0 %v2089_v38  ;;  %585 = vmatpush2.bf16.msra.mxu1 %v2090_v39  ;;  %v185_v38 = vlaneseq }
  0x74   :  { %545 = vmatprep.subr.bf16.mxu0 %v2091_v40  ;;  %586 = vmatprep.subr.bf16.mxu1 %v2093_v41 }
  0x75   :  { %v2569_v39 = vshrl.u32 %v185_v38, 7 }
  0x77   :  { %546 = vmatpush2.bf16.msra.mxu0 %v2095_v42  ;;  %587 = vmatpush2.bf16.msra.mxu1 %v2096_v43  ;;  %v2572_v40 = vsub.s32 0, %v2569_v39  ;;  %v195_v41 = vsub.s32 2, %v2569_v39  ;;  %v183_v42 = vld [vmem:[#allocation7] sm:$0xf]  ;;  %v2576_v43 = vsub.s32 1, %v2569_v39 }
  0x78   :  { %547 = vmatprep.subr.bf16.mxu0 %v2097_v44  ;;  %588 = vmatprep.subr.bf16.mxu1 %v2099_v45  ;;  %v199_v44 = vsub.s32 3, %v2569_v39 }
  0x79   :  { %v188_v45 = vrot.slane %v183_v42, %v2572_v40  ;;  %v192_v47 = vrot.slane %v183_v42, %v2576_v43 }
  0x7b   :  { %548 = vmatpush2.bf16.msra.mxu0 %v2101_v46  ;;  %589 = vmatpush2.bf16.msra.mxu1 %v2102_v48  ;;  %v196_v46 = vrot.slane %v183_v42, %v195_v41  ;;  %v200_v48 = vrot.slane %v183_v42, %v199_v44 }
  0x7c   :  { %549 = vmatprep.subr.bf16.mxu0 %v2103_v50  ;;  %590 = vmatprep.subr.bf16.mxu1 %v2105_v51 }
  0x7f   :  { %550 = vmatpush2.bf16.msra.mxu0 %v2107_v52  ;;  %591 = vmatpush2.bf16.msra.mxu1 %v2108_v53 }
  0x80   :  { %551 = vmatprep.subr.bf16.mxu0 %v2109_v54  ;;  %592 = vmatprep.subr.bf16.mxu1 %v2111_v55 }
  0x83   :  { %552 = vmatpush2.bf16.msra.mxu0 %v2113_v56  ;;  %593 = vmatpush2.bf16.msra.mxu1 %v2114_v57 }
  0x84   :  { %553 = vmatprep.subr.bf16.mxu0 %v2115_v58  ;;  %594 = vmatprep.subr.bf16.mxu1 %v2117_v59 }
  0x87   :  { %554 = vmatpush2.bf16.msra.mxu0 %v2119_v60  ;;  %595 = vmatpush2.bf16.msra.mxu1 %v2120_v61 }
  0x88   :  { %555 = vmatprep.subr.bf16.mxu0 %v2121_v62  ;;  %596 = vmatprep.subr.bf16.mxu1 %v2123_v63 }
  0x8b   :  { %556 = vmatpush2.bf16.msra.mxu0 %v2125_v0  ;;  %597 = vmatpush2.bf16.msra.mxu1 %v2126_v1 }
  0x8c   :  { %1972 = vmatprep.subr.bf16.mxu0 %v2127_v3  ;;  %1994 = vmatprep.subr.bf16.mxu1 %v2128_v4  ;;  %v2159_v4 = vld [vmem:[#allocation10 + $0xe0] ss:$16 sps:$4 sm:$0xff]  }
  0x8e   :  { %558 = vmatmul.mubr.bf16.vlgmr.msra.gmra.mxu0 %v117_v6  ;;  %599 = vmatmul.mubr.bf16.vlgmr.msra.gmra.mxu1 %v117_v6 }
  0x8f   :  { %1973 = vmatpush3.bf16.msra.mxu0 %v2129_v5  ;;  %1995 = vmatpush3.bf16.msra.mxu1 %v2130_v7  ;;  %v2162_v5 = vld [vmem:[#allocation10 + $0xe8] ss:$16 sps:$4 sm:$0xff]   ;;  %v2167_v7 = vld [vmem:[#allocation10 + $0xc4] ss:$16 sps:$4 sm:$0xff]  }
  0x90   :  { %1974 = vmatprep.subr.bf16.mxu0 %v2131_v8  ;;  %1996 = vmatprep.subr.bf16.mxu1 %v2132_v9  ;;  %v2170_v8 = vld [vmem:[#allocation10 + $0xcc] ss:$16 sps:$4 sm:$0xff]   ;;  %v2165_v9 = vld [vmem:[#allocation10 + $0xc0] ss:$16 sps:$4 sm:$0xff]  }
  0x93   :  { %1975 = vmatpush3.bf16.msra.mxu0 %v2133_v10  ;;  %1997 = vmatpush3.bf16.msra.mxu1 %v2134_v11  ;;  %v2168_v10 = vld [vmem:[#allocation10 + $0xc8] ss:$16 sps:$4 sm:$0xff]   ;;  %v2173_v11 = vld [vmem:[#allocation10 + $0xa4] ss:$16 sps:$4 sm:$0xff]  }
  0x94   :  { %1976 = vmatprep.subr.bf16.mxu0 %v2135_v12  ;;  %1998 = vmatprep.subr.bf16.mxu1 %v2136_v13  ;;  %v2176_v12 = vld [vmem:[#allocation10 + $0xac] ss:$16 sps:$4 sm:$0xff]   ;;  %v2171_v13 = vld [vmem:[#allocation10 + $0xa0] ss:$16 sps:$4 sm:$0xff]  }
  0x97   :  { %1977 = vmatpush3.bf16.msra.mxu0 %v2137_v14  ;;  %1999 = vmatpush3.bf16.msra.mxu1 %v2138_v15  ;;  %v2174_v14 = vld [vmem:[#allocation10 + $0xa8] ss:$16 sps:$4 sm:$0xff]   ;;  %v2179_v15 = vld [vmem:[#allocation10 + $0x84] ss:$16 sps:$4 sm:$0xff]  }
  0x98   :  { %1978 = vmatprep.subr.bf16.mxu0 %v2139_v16  ;;  %2000 = vmatprep.subr.bf16.mxu1 %v2140_v17  ;;  %v2182_v16 = vld [vmem:[#allocation10 + $0x8c] ss:$16 sps:$4 sm:$0xff]   ;;  %v2177_v17 = vld [vmem:[#allocation10 + $0x80] ss:$16 sps:$4 sm:$0xff]  }
  0x9b   :  { %1979 = vmatpush3.bf16.msra.mxu0 %v2141_v18  ;;  %2001 = vmatpush3.bf16.msra.mxu1 %v2142_v19  ;;  %v2180_v18 = vld [vmem:[#allocation10 + $0x88] ss:$16 sps:$4 sm:$0xff]   ;;  %v2185_v19 = vld [vmem:[#allocation10 + $0x64] ss:$16 sps:$4 sm:$0xff]  }
  0x9c   :  { %1980 = vmatprep.subr.bf16.mxu0 %v2143_v20  ;;  %2002 = vmatprep.subr.bf16.mxu1 %v2144_v21  ;;  %v2188_v20 = vld [vmem:[#allocation10 + $0x6c] ss:$16 sps:$4 sm:$0xff]   ;;  %v2183_v21 = vld [vmem:[#allocation10 + $0x60] ss:$16 sps:$4 sm:$0xff]  }
  0x9f   :  { %1981 = vmatpush3.bf16.msra.mxu0 %v2145_v22  ;;  %2003 = vmatpush3.bf16.msra.mxu1 %v2146_v23  ;;  %v2186_v22 = vld [vmem:[#allocation10 + $0x68] ss:$16 sps:$4 sm:$0xff]   ;;  %v2191_v23 = vld [vmem:[#allocation10 + $0x44] ss:$16 sps:$4 sm:$0xff]  }
  0xa0   :  { %1982 = vmatprep.subr.bf16.mxu0 %v2147_v24  ;;  %2004 = vmatprep.subr.bf16.mxu1 %v2148_v25  ;;  %v2194_v24 = vld [vmem:[#allocation10 + $0x4c] ss:$16 sps:$4 sm:$0xff]   ;;  %v2189_v25 = vld [vmem:[#allocation10 + $0x40] ss:$16 sps:$4 sm:$0xff]  }
  0xa3   :  { %1983 = vmatpush3.bf16.msra.mxu0 %v2149_v26  ;;  %2005 = vmatpush3.bf16.msra.mxu1 %v2150_v27  ;;  %v2192_v26 = vld [vmem:[#allocation10 + $0x48] ss:$16 sps:$4 sm:$0xff]   ;;  %v2197_v27 = vld [vmem:[#allocation10 + $0x24] ss:$16 sps:$4 sm:$0xff]  }
  0xa4   :  { %1984 = vmatprep.subr.bf16.mxu0 %v2151_v28  ;;  %2006 = vmatprep.subr.bf16.mxu1 %v2152_v29  ;;  %v2200_v28 = vld [vmem:[#allocation10 + $0x2c] ss:$16 sps:$4 sm:$0xff]   ;;  %v2195_v29 = vld [vmem:[#allocation10 + $0x20] ss:$16 sps:$4 sm:$0xff]  }
  0xa7   :  { %1985 = vmatpush3.bf16.msra.mxu0 %v2153_v30  ;;  %2007 = vmatpush3.bf16.msra.mxu1 %v2154_v31  ;;  %v2198_v30 = vld [vmem:[#allocation10 + $0x28] ss:$16 sps:$4 sm:$0xff]   ;;  %v2203_v31 = vld [vmem:[#allocation10 + $0x4] ss:$16 sps:$4 sm:$0xff]  }
  0xa8   :  { %1986 = vmatprep.subr.bf16.mxu0 %v2155_v32  ;;  %2008 = vmatprep.subr.bf16.mxu1 %v2156_v33  ;;  %v2206_v32 = vld [vmem:[#allocation10 + $0xc] ss:$16 sps:$4 sm:$0xff]   ;;  %v2201_v33 = vld [vmem:[#allocation10] ss:$16 sps:$4 sm:$0xff]  }
  0xab   :  { %1987 = vmatpush3.bf16.msra.mxu0 %v2157_v34  ;;  %2009 = vmatpush3.bf16.msra.mxu1 %v2158_v35  ;;  %v2204_v34 = vld [vmem:[#allocation10 + $0x8] ss:$16 sps:$4 sm:$0xff]   ;;  %v2487_v35 = vmov 0  }
  0xac   :  { %1175 = vmatprep.subr.bf16.mxu0 %v2161_v36  ;;  %1216 = vmatprep.subr.bf16.mxu1 %v2164_v37  ;;  %v2209_v36 = vld [vmem:[#allocation11 + $0x74] ss:$8 sps:$4 sm:$0xff]  }
  0xad   :  { %v2212_v37 = vld [vmem:[#allocation11 + $0x174] ss:$8 sps:$4 sm:$0xff]  }
 0x14e   :  { %v559_v49 = vpop.f32.mrf.mxu0  ;;  %v600_v50 = vpop.f32.mrf.mxu1 }
 0x14f   :  { %v560_v51 = vadd.f32 %v559_v49, %v188_v45  ;;  %v601_v52 = vadd.f32 %v600_v50, %v196_v46  ;;  %v1843_v45 = vld [vmem:[%s2612_s4] ss:$0 sm:$0xff] }
 0x150   :  { %v561_v53 = vpop.f32.mrf.mxu0  ;;  %v602_v54 = vpop.f32.mrf.mxu1 }
 0x151   :  { %v609_v55 = vmax.f32 %v601_v52, 0.0  ;;  %v562_v56 = vadd.f32 %v561_v53, %v192_v47  ;;  %v603_v57 = vadd.f32 %v602_v54, %v200_v48  ;;  %v607_v58 = vmax.f32 %v560_v51, 0.0 }
 0x152   :  { %v563_v59 = vpop.f32.mrf.mxu0  ;;  %v604_v60 = vpop.f32.mrf.mxu1 }
 0x153   :  { %v608_v61 = vmax.f32 %v562_v56, 0.0  ;;  %v610_v62 = vmax.f32 %v603_v57, 0.0  ;;  %v613_v63 = vpack.c.bf16 %v609_v55, %v609_v55  ;;  %v611_v6 = vpack.c.bf16 %v607_v58, %v607_v58  ;;  %v2207_v57 = vld [vmem:[#allocation11 + $0x70] ss:$8 sps:$4 sm:$0xff]   ;;  %v2215_v60 = vld [vmem:[#allocation11 + $0x64] ss:$8 sps:$4 sm:$0xff]  }
 0x154   :  { %v564_v0 = vpop.f32.mrf.mxu0  ;;  %v605_v1 = vpop.f32.mrf.mxu1  ;;  %v2210_v58 = vld [vmem:[#allocation11 + $0x170] ss:$8 sps:$4 sm:$0xff]  }
 0x155   :  { %v612_v2 = vpack.c.bf16 %v608_v61, %v608_v61  ;;  %v614_v3 = vpack.c.bf16 %v610_v62, %v610_v62  ;;  %v2218_v61 = vld [vmem:[#allocation11 + $0x164] ss:$8 sps:$4 sm:$0xff]   ;;  %v2213_v62 = vld [vmem:[#allocation11 + $0x60] ss:$8 sps:$4 sm:$0xff]   ;;  %v2221_v0 = vld [vmem:[#allocation11 + $0x54] ss:$8 sps:$4 sm:$0xff]  }
 0x156   :  { %v2224_v1 = vld [vmem:[#allocation11 + $0x154] ss:$8 sps:$4 sm:$0xff]  }
 0x157   :  { %910 = vmatprep.mubr.bf16.mxu0 %v612_v2  ;;  %950 = vmatprep.mubr.bf16.mxu1 %v614_v3  ;;  %v2219_v2 = vld [vmem:[#allocation11 + $0x50] ss:$8 sps:$4 sm:$0xff]  }
 0x158   :  { %911 = vmatmul.mubr.bf16.vlgmr.msra.gmra.mxu0 %v611_v6  ;;  %951 = vmatmul.mubr.bf16.vlgmr.msra.gmra.mxu1 %v613_v63  ;;  %v2216_v63 = vld [vmem:[#allocation11 + $0x160] ss:$8 sps:$4 sm:$0xff]   ;;  %v2222_v3 = vld [vmem:[#allocation11 + $0x150] ss:$8 sps:$4 sm:$0xff]  }
 0x159   :  { %1176 = vmatpush1.bf16.msra.mxu0 %v2159_v4  ;;  %1217 = vmatpush1.bf16.msra.mxu1 %v2162_v5  ;;  %v2227_v4 = vld [vmem:[#allocation11 + $0x44] ss:$8 sps:$4 sm:$0xff]   ;;  %v2225_v6 = vld [vmem:[#allocation11 + $0x40] ss:$8 sps:$4 sm:$0xff]  }
 0x15a   :  { %1177 = vmatprep.subr.bf16.mxu0 %v2167_v7  ;;  %1218 = vmatprep.subr.bf16.mxu1 %v2170_v8  ;;  %v2230_v5 = vld [vmem:[#allocation11 + $0x144] ss:$8 sps:$4 sm:$0xff]   ;;  %v2228_v7 = vld [vmem:[#allocation11 + $0x140] ss:$8 sps:$4 sm:$0xff]   ;;  %v2233_v8 = vld [vmem:[#allocation11 + $0x34] ss:$8 sps:$4 sm:$0xff]  }
 0x15b   :  { %1207 = vmatprep.mubr.bf16.mxu0 %v2487_v35  ;;  %1248 = vmatprep.mubr.bf16.mxu1 %v2487_v35  ;;  %v2270_v35 = vld [vmem:[#allocation11 + $0x1d0] ss:$8 sps:$4 sm:$0xff]  }
 0x15d   :  { %1178 = vmatpush1.bf16.msra.mxu0 %v2165_v9  ;;  %1219 = vmatpush1.bf16.msra.mxu1 %v2168_v10  ;;  %v2236_v9 = vld [vmem:[#allocation11 + $0x134] ss:$8 sps:$4 sm:$0xff]   ;;  %v2231_v10 = vld [vmem:[#allocation11 + $0x30] ss:$8 sps:$4 sm:$0xff]  }
 0x15e   :  { %1179 = vmatprep.subr.bf16.mxu0 %v2173_v11  ;;  %1220 = vmatprep.subr.bf16.mxu1 %v2176_v12  ;;  %v2234_v11 = vld [vmem:[#allocation11 + $0x130] ss:$8 sps:$4 sm:$0xff]   ;;  %v2239_v12 = vld [vmem:[#allocation11 + $0x24] ss:$8 sps:$4 sm:$0xff]  }
 0x161   :  { %1180 = vmatpush1.bf16.msra.mxu0 %v2171_v13  ;;  %1221 = vmatpush1.bf16.msra.mxu1 %v2174_v14  ;;  %v2242_v13 = vld [vmem:[#allocation11 + $0x124] ss:$8 sps:$4 sm:$0xff]   ;;  %v2237_v14 = vld [vmem:[#allocation11 + $0x20] ss:$8 sps:$4 sm:$0xff]  }
 0x162   :  { %1181 = vmatprep.subr.bf16.mxu0 %v2179_v15  ;;  %1222 = vmatprep.subr.bf16.mxu1 %v2182_v16  ;;  %v2240_v15 = vld [vmem:[#allocation11 + $0x120] ss:$8 sps:$4 sm:$0xff]   ;;  %v2245_v16 = vld [vmem:[#allocation11 + $0x14] ss:$8 sps:$4 sm:$0xff]  }
 0x165   :  { %1182 = vmatpush1.bf16.msra.mxu0 %v2177_v17  ;;  %1223 = vmatpush1.bf16.msra.mxu1 %v2180_v18  ;;  %v2248_v17 = vld [vmem:[#allocation11 + $0x114] ss:$8 sps:$4 sm:$0xff]   ;;  %v2243_v18 = vld [vmem:[#allocation11 + $0x10] ss:$8 sps:$4 sm:$0xff]  }
 0x166   :  { %1183 = vmatprep.subr.bf16.mxu0 %v2185_v19  ;;  %1224 = vmatprep.subr.bf16.mxu1 %v2188_v20  ;;  %v2246_v19 = vld [vmem:[#allocation11 + $0x110] ss:$8 sps:$4 sm:$0xff]   ;;  %v2251_v20 = vld [vmem:[#allocation11 + $0x4] ss:$8 sps:$4 sm:$0xff]  }
 0x169   :  { %1184 = vmatpush1.bf16.msra.mxu0 %v2183_v21  ;;  %1225 = vmatpush1.bf16.msra.mxu1 %v2186_v22  ;;  %v2254_v21 = vld [vmem:[#allocation11 + $0x104] ss:$8 sps:$4 sm:$0xff]   ;;  %v2249_v22 = vld [vmem:[#allocation11] ss:$8 sps:$4 sm:$0xff]  }
 0x16a   :  { %1185 = vmatprep.subr.bf16.mxu0 %v2191_v23  ;;  %1226 = vmatprep.subr.bf16.mxu1 %v2194_v24  ;;  %v2252_v23 = vld [vmem:[#allocation11 + $0x100] ss:$8 sps:$4 sm:$0xff]   ;;  %v2257_v24 = vld [vmem:[#allocation11 + $0xf4] ss:$8 sps:$4 sm:$0xff]  }
 0x16d   :  { %1186 = vmatpush1.bf16.msra.mxu0 %v2189_v25  ;;  %1227 = vmatpush1.bf16.msra.mxu1 %v2192_v26  ;;  %v2260_v25 = vld [vmem:[#allocation11 + $0x1f4] ss:$8 sps:$4 sm:$0xff]   ;;  %v2255_v26 = vld [vmem:[#allocation11 + $0xf0] ss:$8 sps:$4 sm:$0xff]  }
 0x16e   :  { %1187 = vmatprep.subr.bf16.mxu0 %v2197_v27  ;;  %1228 = vmatprep.subr.bf16.mxu1 %v2200_v28  ;;  %v2258_v27 = vld [vmem:[#allocation11 + $0x1f0] ss:$8 sps:$4 sm:$0xff]   ;;  %v2263_v28 = vld [vmem:[#allocation11 + $0xe4] ss:$8 sps:$4 sm:$0xff]  }
 0x171   :  { %1188 = vmatpush1.bf16.msra.mxu0 %v2195_v29  ;;  %1229 = vmatpush1.bf16.msra.mxu1 %v2198_v30  ;;  %v2266_v29 = vld [vmem:[#allocation11 + $0x1e4] ss:$8 sps:$4 sm:$0xff]   ;;  %v2261_v30 = vld [vmem:[#allocation11 + $0xe0] ss:$8 sps:$4 sm:$0xff]  }
 0x172   :  { %1189 = vmatprep.subr.bf16.mxu0 %v2203_v31  ;;  %1230 = vmatprep.subr.bf16.mxu1 %v2206_v32  ;;  %v2264_v31 = vld [vmem:[#allocation11 + $0x1e0] ss:$8 sps:$4 sm:$0xff]   ;;  %v2269_v32 = vld [vmem:[#allocation11 + $0xd4] ss:$8 sps:$4 sm:$0xff]  }
 0x175   :  { %1190 = vmatpush1.bf16.msra.mxu0 %v2201_v33  ;;  %1231 = vmatpush1.bf16.msra.mxu1 %v2204_v34  ;;  %v2272_v33 = vld [vmem:[#allocation11 + $0x1d4] ss:$8 sps:$4 sm:$0xff]   ;;  %v2267_v34 = vld [vmem:[#allocation11 + $0xd0] ss:$8 sps:$4 sm:$0xff]  }
 0x176   :  { %1661 = vmatprep.subr.bf16.mxu0 %v2209_v36  ;;  %1702 = vmatprep.subr.bf16.mxu1 %v2212_v37  ;;  %v2275_v36 = vld [vmem:[#allocation11 + $0xc4] ss:$8 sps:$4 sm:$0xff]  }
 0x177   :  { %v2278_v37 = vld [vmem:[#allocation11 + $0x1c4] ss:$8 sps:$4 sm:$0xff]  }
 0x218   :  { %v1988_v38 = vpop.f32.mrf.mxu0  ;;  %v2010_v42 = vpop.f32.mrf.mxu1 }
 0x21a   :  { %v1989_v46 = vpop.f32.mrf.mxu0  ;;  %v2011_v47 = vpop.f32.mrf.mxu1 }
 0x21b   :  { %v1990_v48 = vadd.f32 %v1989_v46, %v1988_v38  ;;  %v2012_v52 = vadd.f32 %v2011_v47, %v2010_v42  ;;  %v2273_v38 = vld [vmem:[#allocation11 + $0xc0] ss:$8 sps:$4 sm:$0xff]   ;;  %v2284_v46 = vld [vmem:[#allocation11 + $0x1b4] ss:$8 sps:$4 sm:$0xff]   ;;  %v2279_v47 = vld [vmem:[#allocation11 + $0xb0] ss:$8 sps:$4 sm:$0xff]  }
 0x21c   :  { %v1991_v49 = vpop.f32.mrf.mxu0  ;;  %v2013_v50 = vpop.f32.mrf.mxu1  ;;  %v2276_v42 = vld [vmem:[#allocation11 + $0x1c0] ss:$8 sps:$4 sm:$0xff]  }
 0x21d   :  { %v913_v51 = vadd.f32 %v1990_v48, %v1843_v45  ;;  %v2281_v45 = vld [vmem:[#allocation11 + $0xb4] ss:$8 sps:$4 sm:$0xff]   ;;  %v2282_v48 = vld [vmem:[#allocation11 + $0x1b0] ss:$8 sps:$4 sm:$0xff]   ;;  %v2287_v49 = vld [vmem:[#allocation11 + $0xa4] ss:$8 sps:$4 sm:$0xff]  }
 0x21e   :  { %v1992_v53 = vpop.f32.mrf.mxu0  ;;  %v2014_v54 = vpop.f32.mrf.mxu1  ;;  %v2290_v50 = vld [vmem:[#allocation11 + $0x1a4] ss:$8 sps:$4 sm:$0xff]  }
 0x21f   :  { %v953_v55 = vadd.f32 %v2012_v52, %v913_v51  ;;  %v2285_v51 = vld [vmem:[#allocation11 + $0xa0] ss:$8 sps:$4 sm:$0xff]   ;;  %v2293_v53 = vld [vmem:[#allocation11 + $0x94] ss:$8 sps:$4 sm:$0xff]  }
 0x220   :  { %v2288_v52 = vld [vmem:[#allocation11 + $0x1a0] ss:$8 sps:$4 sm:$0xff]   ;;  %v2296_v54 = vld [vmem:[#allocation11 + $0x194] ss:$8 sps:$4 sm:$0xff]  }
 0x221   :  { %v958_v56 = vmax.f32 %v953_v55, 0.0  ;;  %v2291_v55 = vld [vmem:[#allocation11 + $0x90] ss:$8 sps:$4 sm:$0xff]  }
 0x223   :  { %v960_v59 = vpack.c.bf16 %v958_v56, %v958_v56  ;;  %959 = vst [vmem:[#allocation14] sm:$0xff] %v958_v56  ;;  %v2294_v56 = vld [vmem:[#allocation11 + $0x190] ss:$8 sps:$4 sm:$0xff]  }
 0x225   :  { %1208 = vmatmul.mubr.bf16.vlgmr.msra.gmra.mxu0 %v960_v59  ;;  %1249 = vmatmul.mubr.bf16.vlgmr.msra.gmra.mxu1 %v960_v59  ;;  %v2297_v59 = vld [vmem:[#allocation11 + $0x80] ss:$8 sps:$4 sm:$0xff]  }
 0x226   :  { %1662 = vmatpush1.bf16.msra.mxu0 %v2207_v57  ;;  %1703 = vmatpush1.bf16.msra.mxu1 %v2210_v58  ;;  %v2299_v57 = vld [vmem:[#allocation11 + $0x84] ss:$8 sps:$4 sm:$0xff]  }
 0x227   :  { %1663 = vmatprep.subr.bf16.mxu0 %v2215_v60  ;;  %1704 = vmatprep.subr.bf16.mxu1 %v2218_v61  ;;  %v2302_v58 = vld [vmem:[#allocation11 + $0x184] ss:$8 sps:$4 sm:$0xff]   ;;  %v2300_v60 = vld [vmem:[#allocation11 + $0x180] ss:$8 sps:$4 sm:$0xff]  }
 0x228   :  { %v993_v61 = vld [vmem:[%s2614_s6] sm:$0xf]  ;;  %s2488_s6 = smov [#allocation14]  }
 0x229   :  { %s1763_s17 = sshll.u32 %s2488_s6, 4  ;;  %s1764_s17 = int_to_ptr.vmem [resolvable:$true] %s1763_s17 }
 0x22a   :  { %1664 = vmatpush1.bf16.msra.mxu0 %v2213_v62  ;;  %1705 = vmatpush1.bf16.msra.mxu1 %v2216_v63  ;;  %v998_v62 = vrot.slane %v993_v61, %v2572_v40  ;;  %v1006_v63 = vrot.slane %v993_v61, %v195_v41  ;;  %s2423_s27 = scalar_lea.vmem %s1764_s17, 128  ;;  %p2428_p3 = scmp.lt.s32.totalorder %s1764_s17, %s1764_s17 }
 0x22b   :  { %1665 = vmatprep.subr.bf16.mxu0 %v2221_v0  ;;  %1706 = vmatprep.subr.bf16.mxu1 %v2224_v1  ;;  %v1002_v0 = vrot.slane %v993_v61, %v2576_v43  ;;  %v1010_v1 = vrot.slane %v993_v61, %v199_v44  ;;  %p2424_p2 = scmp.ne.s32.totalorder %s1764_s17, %s2423_s27  ;;  %p2429_p4 = scmp.lt.s32.totalorder %s2423_s27, %s2423_s27 }
 0x22d   :  { %p2430_p5 = por %p2429_p4, %p2428_p3 }
 0x22e   :  { %1666 = vmatpush1.bf16.msra.mxu0 %v2219_v2  ;;  %1707 = vmatpush1.bf16.msra.mxu1 %v2222_v3 }
 0x22f   :  { %1667 = vmatprep.subr.bf16.mxu0 %v2227_v4  ;;  %1708 = vmatprep.subr.bf16.mxu1 %v2230_v5  ;;  %p2431_p6 = pnand %p2430_p5, %p2424_p2 }
 0x232   :  { %1668 = vmatpush1.bf16.msra.mxu0 %v2225_v6  ;;  %1709 = vmatpush1.bf16.msra.mxu1 %v2228_v7 }
 0x233   :  { %1669 = vmatprep.subr.bf16.mxu0 %v2233_v8  ;;  %1710 = vmatprep.subr.bf16.mxu1 %v2236_v9 }
 0x236   :  { %1670 = vmatpush1.bf16.msra.mxu0 %v2231_v10  ;;  %1711 = vmatpush1.bf16.msra.mxu1 %v2234_v11 }
 0x237   :  { %1671 = vmatprep.subr.bf16.mxu0 %v2239_v12  ;;  %1712 = vmatprep.subr.bf16.mxu1 %v2242_v13 }
 0x23a   :  { %1672 = vmatpush1.bf16.msra.mxu0 %v2237_v14  ;;  %1713 = vmatpush1.bf16.msra.mxu1 %v2240_v15 }
 0x23b   :  { %1673 = vmatprep.subr.bf16.mxu0 %v2245_v16  ;;  %1714 = vmatprep.subr.bf16.mxu1 %v2248_v17 }
 0x23e   :  { %1674 = vmatpush1.bf16.msra.mxu0 %v2243_v18  ;;  %1715 = vmatpush1.bf16.msra.mxu1 %v2246_v19 }
 0x23f   :  { %1675 = vmatprep.subr.bf16.mxu0 %v2251_v20  ;;  %1716 = vmatprep.subr.bf16.mxu1 %v2254_v21 }
 0x242   :  { %1676 = vmatpush1.bf16.msra.mxu0 %v2249_v22  ;;  %1717 = vmatpush1.bf16.msra.mxu1 %v2252_v23 }
 0x243   :  { %1677 = vmatprep.subr.bf16.mxu0 %v2257_v24  ;;  %1718 = vmatprep.subr.bf16.mxu1 %v2260_v25 }
 0x246   :  { %1678 = vmatpush2.bf16.msra.mxu0 %v2255_v26  ;;  %1719 = vmatpush2.bf16.msra.mxu1 %v2258_v27 }
 0x247   :  { %1679 = vmatprep.subr.bf16.mxu0 %v2263_v28  ;;  %1720 = vmatprep.subr.bf16.mxu1 %v2266_v29 }
 0x24a   :  { %1680 = vmatpush2.bf16.msra.mxu0 %v2261_v30  ;;  %1721 = vmatpush2.bf16.msra.mxu1 %v2264_v31 }
 0x24b   :  { %1681 = vmatprep.subr.bf16.mxu0 %v2269_v32  ;;  %1722 = vmatprep.subr.bf16.mxu1 %v2272_v33 }
 0x24e   :  { %1682 = vmatpush2.bf16.msra.mxu0 %v2267_v34  ;;  %1723 = vmatpush2.bf16.msra.mxu1 %v2270_v35 }
 0x24f   :  { %1683 = vmatprep.subr.bf16.mxu0 %v2275_v36  ;;  %1724 = vmatprep.subr.bf16.mxu1 %v2278_v37 }
 0x252   :  { %1684 = vmatpush2.bf16.msra.mxu0 %v2273_v38  ;;  %1725 = vmatpush2.bf16.msra.mxu1 %v2276_v42 }
 0x253   :  { %1685 = vmatprep.subr.bf16.mxu0 %v2281_v45  ;;  %1726 = vmatprep.subr.bf16.mxu1 %v2284_v46 }
 0x256   :  { %1686 = vmatpush2.bf16.msra.mxu0 %v2279_v47  ;;  %1727 = vmatpush2.bf16.msra.mxu1 %v2282_v48 }
 0x257   :  { %1687 = vmatprep.subr.bf16.mxu0 %v2287_v49  ;;  %1728 = vmatprep.subr.bf16.mxu1 %v2290_v50 }
 0x25a   :  { %1688 = vmatpush2.bf16.msra.mxu0 %v2285_v51  ;;  %1729 = vmatpush2.bf16.msra.mxu1 %v2288_v52 }
 0x25b   :  { %1689 = vmatprep.subr.bf16.mxu0 %v2293_v53  ;;  %1730 = vmatprep.subr.bf16.mxu1 %v2296_v54 }
 0x25e   :  { %1690 = vmatpush2.bf16.msra.mxu0 %v2291_v55  ;;  %1731 = vmatpush2.bf16.msra.mxu1 %v2294_v56 }
 0x25f   :  { %1691 = vmatprep.subr.bf16.mxu0 %v2299_v57  ;;  %1732 = vmatprep.subr.bf16.mxu1 %v2302_v58 }
 0x262   :  { %1692 = vmatpush2.bf16.msra.mxu0 %v2297_v59  ;;  %1733 = vmatpush2.bf16.msra.mxu1 %v2300_v60 }
 0x2e5   :  { %v1209_v2 = vpop.f32.mrf.mxu0  ;;  %v1250_v3 = vpop.f32.mrf.mxu1 }
 0x2e6   :  { %v1210_v4 = vadd.f32 %v1209_v2, %v998_v62  ;;  %v1251_v5 = vadd.f32 %v1250_v3, %v1006_v63 }
 0x2e7   :  { %v1211_v6 = vpop.f32.mrf.mxu0  ;;  %v1252_v7 = vpop.f32.mrf.mxu1 }
 0x2e8   :  { %v1212_v8 = vadd.f32 %v1211_v6, %v1002_v0  ;;  %v1253_v9 = vadd.f32 %v1252_v7, %v1010_v1  ;;  %v1257_v10 = vmax.f32 %v1210_v4, 0.0  ;;  %v1259_v11 = vmax.f32 %v1251_v5, 0.0 }
 0x2e9   :  { %v1213_v12 = vpop.f32.mrf.mxu0  ;;  %v1254_v13 = vpop.f32.mrf.mxu1 }
 0x2ea   :  { %v1258_v14 = vmax.f32 %v1212_v8, 0.0  ;;  %v1260_v15 = vmax.f32 %v1253_v9, 0.0  ;;  %v1261_v39 = vpack.c.bf16 %v1257_v10, %v1257_v10  ;;  %v1263_v44 = vpack.c.bf16 %v1259_v11, %v1259_v11 }
 0x2eb   :  { %v1214_v41 = vpop.f32.mrf.mxu0  ;;  %v1255_v16 = vpop.f32.mrf.mxu1 }
 0x2ec   :  { %v1262_v17 = vpack.c.bf16 %v1258_v14, %v1258_v14  ;;  %v1264_v18 = vpack.c.bf16 %v1260_v15, %v1260_v15 }
 0x2ee   :  { %1693 = vmatprep.mubr.bf16.mxu0 %v1262_v17  ;;  %1734 = vmatprep.mubr.bf16.mxu1 %v1264_v18 }
 0x2ef   :  { %1694 = vmatmul.mubr.bf16.vlgmr.msra.gmra.mxu0 %v1261_v39  ;;  %1735 = vmatmul.mubr.bf16.vlgmr.msra.gmra.mxu1 %v1263_v44 }
 0x2f0   :  { %2434 = shalt.err (!%p2431_p6)
}
 0x2f1   :  { %1766 = dma.vmem_to_hbm [thread:$0]  %s1764_s17, 128, %s2618_s10, [#allocation15]   ;;  %v1329_v19 = vld [vmem:[%s2616_s8] sm:$0x3] }
 0x2f2   :  { %v1334_v20 = vrot.slane %v1329_v19, %v2572_v40  ;;  %v1338_v21 = vrot.slane %v1329_v19, %v2576_v43  ;;  %s2489_s11 = smov [#allocation13]  }
 0x2f3   :  { %s1753_s12 = sshll.u32 %s2489_s11, 4  ;;  %s1754_s12 = int_to_ptr.vmem [resolvable:$true] %s1753_s12 }
 0x2f4   :  { %s2443_s8 = scalar_lea.vmem %s1754_s12, 256  ;;  %p2448_p8 = scmp.lt.s32.totalorder %s1754_s12, %s1754_s12 }
 0x2f5   :  { %p2444_p7 = scmp.ne.s32.totalorder %s1754_s12, %s2443_s8  ;;  %p2449_p9 = scmp.lt.s32.totalorder %s2443_s8, %s2443_s8 }
 0x2f7   :  { %p2450_p10 = por %p2449_p9, %p2448_p8 }
 0x2f9   :  { %p2451_p11 = pnand %p2450_p10, %p2444_p7 }
 0x3af   :  { %v1695_v22 = vpop.f32.mrf.mxu0  ;;  %v1736_v23 = vpop.f32.mrf.mxu1 }
 0x3b0   :  { %v1696_v24 = vadd.f32 %v1695_v22, %v1334_v20 }
 0x3b1   :  { %v1697_v25 = vpop.f32.mrf.mxu0  ;;  %v1738_v26 = vpop.f32.mrf.mxu1 }
 0x3b2   :  { %v1737_v27 = vadd.f32 %v1736_v23, %v1696_v24  ;;  %v1698_v28 = vadd.f32 %v1697_v25, %v1338_v21 }
 0x3b3   :  { %v1699_v29 = vpop.f32.mrf.mxu0  ;;  %v1740_v30 = vpop.f32.mrf.mxu1 }
 0x3b4   :  { %v1743_v31 = vmax.f32 %v1737_v27, 0.0  ;;  %v1739_v32 = vadd.f32 %v1738_v26, %v1698_v28 }
 0x3b5   :  { %v1700_v33 = vpop.f32.mrf.mxu0  ;;  %v1741_v34 = vpop.f32.mrf.mxu1 }
 0x3b6   :  { %1745 = vst [vmem:[#allocation13] sm:$0xff] %v1743_v31  ;;  %v1744_v35 = vmax.f32 %v1739_v32, 0.0 }
 0x3b8   :  { %1746 = vst [vmem:[#allocation13 + $0x8] sm:$0xff] %v1744_v35 }
 0x3b9   :  { %2454 = shalt.err (!%p2451_p11)
}
 0x3ba   :  { %1756 = dma.vmem_to_hbm [thread:$0]  %s1754_s12, 256, %s2617_s9, [#allocation4]  }
 0x3bb   :  { %2471 = dma.done.wait [#allocation4], 256  }
 0x3bc   :  { %2472 = vsyncadd [#allocation4], 4294967040 }
 0x3bd   :  { %2473 = dma.done.wait [#allocation15], 128  }
 0x3be   :  { %2474 = vsyncadd [#allocation15], 4294967168 }
 0x3bf   :  { %1773 = vsyncpa [#allocation3], 1 }
 0x3c0   :  { %1774 = vsyncpa [#allocation6], 1 }
 0x3c1   :  { %1775 = vsyncpa [#allocation9], 1 }
 0x3c2   :  { %1776 = vsyncpa [#allocation12], 1 }
 0x3c3   :  { %1777 = vsyncpa [#allocation4], 1 }
 0x3c4   :  { %1778 = vsyncpa [#allocation15], 1 }

</bundles_post_ra>
